<compile_context>
chip_gen: v7x
topology: tpu7x:2x2x1
jax: 0.10.0
libtpu: 0.0.40
codegen_flags: <defaults>
</compile_context>

<pallas_src>
import functools

import jax
import jax.numpy as jnp
from jax.experimental import pallas as pl
from jax.experimental.pallas import tpu as pltpu


def _round_up(x, m):
    return (x + m - 1) // m * m


def _cbow_logsoftmax_kernel(act_ref, w_ref, b_ref, out_ref, m_ref, l_ref, *,
                            TILE_V):
    # act_ref: (TILE_B, D) bf16    summed context embeddings (resident over vi)
    # w_ref:   (D, TILE_V) bf16    pre-transposed weight tile (streamed)
    # b_ref:   (1, V_pad) f32      full bias, resident
    # out_ref: (TILE_B, V_pad) f32 resident across the vocab grid axis
    # m_ref/l_ref: (TILE_B, 1) f32 running max / running sum(exp)
    vi = pl.program_id(1)
    n_v = pl.num_programs(1)

    @pl.when(vi == 0)
    def _():
        m_ref[...] = jnp.full_like(m_ref, -jnp.inf)
        l_ref[...] = jnp.zeros_like(l_ref)

    col = pl.multiple_of(vi * TILE_V, TILE_V)

    # bf16 x bf16 -> f32 on the MXU; weight already (K, N) so no XLU transpose.
    logits = jnp.dot(act_ref[...], w_ref[...],
                     preferred_element_type=jnp.float32)
    logits = logits + b_ref[:, pl.ds(col, TILE_V)]        # (TILE_B, TILE_V) f32

    # raw logits into the resident output block (lane-aligned slice)
    out_ref[:, pl.ds(col, TILE_V)] = logits

    # online logsumexp across vocab tiles (all f32)
    tile_max = jnp.max(logits, axis=1, keepdims=True)     # (TILE_B, 1)
    m_new = jnp.maximum(m_ref[...], tile_max)
    l_ref[...] = (l_ref[...] * jnp.exp(m_ref[...] - m_new)
                  + jnp.sum(jnp.exp(logits - m_new), axis=1, keepdims=True))
    m_ref[...] = m_new

    @pl.when(vi == n_v - 1)
    def _():
        out_ref[...] = out_ref[...] - (m_ref[...] + jnp.log(l_ref[...]))


def cbow_forward(x, emb_table, w, b):
    """log_softmax( sum_s emb[x[:, s]] @ W.T + b ).

    x: (B, S) int; emb_table: (V, D) f32; w: (V, D) torch Linear layout; b: (V,).
    """
    B, S = x.shape
    V, D = emb_table.shape

    # ---- embedding gather + context sum hoisted to XLA (perf review) --------
    ids = jnp.clip(x.astype(jnp.int32), 0, V - 1)
    summed = jnp.sum(jnp.take(emb_table.astype(jnp.float32), ids, axis=0),
                     axis=1)                                    # (B, D) f32

    # ---- vocab tiling: big tiles keep the weight stream at HBM roofline -----
    TILE_V = min(2048, _round_up(V, 128))
    V_pad = _round_up(V, TILE_V)
    NV = V_pad // TILE_V

    # ---- batch tiling sized against per-generation VMEM (v7x = 64 MiB) ------
    try:
        vmem_cap = int(pltpu.get_tpu_info().vmem_capacity_bytes)
    except Exception:
        vmem_cap = 64 * 1024 * 1024                 # conservative (v7x) fallback
    out_budget = vmem_cap // 3                      # resident (TILE_B, V_pad) logits
    max_tile_b = out_budget // (2 * V_pad * 4)      # assume double-buffered
    TILE_B = int(min(128, max(16, (max_tile_b // 16) * 16)))
    TILE_B = min(TILE_B, _round_up(B, 16))          # don't over-pad tiny batches
    B_tot = _round_up(B, TILE_B)
    NB = B_tot // TILE_B
    # TODO(synk): when NB > 1 the full weight is re-streamed once per batch
    # tile; a vocab-outer/batch-inner variant (per-(bi,vi) logit tiles + a tiny
    # second normalization pass) would fetch each weight tile exactly once.
    # TODO(synk): when NB == 1 only one v7x TensorCore does work; splitting the
    # vocab range across the two cores with per-core (m, l) partials and an
    # epilogue merge would give up to ~2x there.

    # ---- operand prep: bf16 MXU stream, f32 bias / LSE math ------------------
    act = jnp.zeros((B_tot, D), jnp.bfloat16).at[:B].set(
        summed.astype(jnp.bfloat16))
    w_t = w.astype(jnp.bfloat16).T                  # (D, V): fused cast+transpose
    b_f32 = b.astype(jnp.float32)
    if V_pad != V:
        w_t = jnp.pad(w_t, ((0, 0), (0, V_pad - V)))
        b_f32 = jnp.pad(b_f32, (0, V_pad - V), constant_values=-1e30)
    b2d = b_f32.reshape(1, V_pad)

    vmem_need = (2 * TILE_B * V_pad * 4             # resident logits block
                 + 2 * D * TILE_V * 2               # weight double buffer
                 + 2 * TILE_B * D * 2               # activation
                 + 2 * V_pad * 4                    # bias
                 + 8 * TILE_B * 4)                  # m/l scratch
    vmem_limit = int(min(vmem_cap * 9 // 10,
                         max(vmem_need * 5 // 4, 32 * 1024 * 1024)))

    kernel = functools.partial(_cbow_logsoftmax_kernel, TILE_V=TILE_V)

    out = pl.pallas_call(
        kernel,
        out_shape=jax.ShapeDtypeStruct((B_tot, V_pad), jnp.float32),
        grid=(NB, NV),
        in_specs=[
            pl.BlockSpec((TILE_B, D), lambda bi, vi: (bi, 0)),   # summed act (resident over vi)
            pl.BlockSpec((D, TILE_V), lambda bi, vi: (0, vi)),   # weight stream, pre-transposed
            pl.BlockSpec((1, V_pad), lambda bi, vi: (0, 0)),     # bias, fully resident
        ],
        out_specs=pl.BlockSpec((TILE_B, V_pad), lambda bi, vi: (bi, 0)),
        scratch_shapes=[
            pltpu.VMEM((TILE_B, 1), jnp.float32),   # running max
            pltpu.VMEM((TILE_B, 1), jnp.float32),   # running sum(exp)
        ],
        compiler_params=pltpu.CompilerParams(
            dimension_semantics=("parallel", "arbitrary"),
            vmem_limit_bytes=vmem_limit),
    )(act, w_t, b2d)

    return out[:B, :V]


def cbow_reference(x, emb_table, w, b, matmul_dtype=jnp.float32):
    summed = jnp.sum(jnp.take(emb_table, x, axis=0), axis=1)
    logits = jnp.dot(summed.astype(matmul_dtype), w.astype(matmul_dtype).T,
                     preferred_element_type=jnp.float32) + b
    return jax.nn.log_softmax(logits, axis=1)


if __name__ == "__main__":
    # Shapes implied by the module: batch=2, context(seq)=8, embedding_dim=32,
    # vocab_size=128.
    B, S, D, V = 2, 8, 32, 128

    key = jax.random.PRNGKey(0)
    k_emb, k_w, k_b, k_x = jax.random.split(key, 4)

    emb_table = jax.random.normal(k_emb, (V, D), dtype=jnp.float32)  # nn.Embedding weight
    w = jax.random.normal(k_w, (V, D), dtype=jnp.float32) * 0.1      # nn.Linear weight (V, D)
    b = jax.random.normal(k_b, (V,), dtype=jnp.float32) * 0.1        # nn.Linear bias
    x = jax.random.randint(k_x, (B, S), minval=0, maxval=V, dtype=jnp.int32)

    out = jax.block_until_ready(cbow_forward(x, emb_table, w, b))

    ref_bf16 = jax.block_until_ready(
        cbow_reference(x, emb_table, w, b, matmul_dtype=jnp.bfloat16))
    ref_f32 = jax.block_until_ready(
        cbow_reference(x, emb_table, w, b, matmul_dtype=jnp.float32))

    assert out.shape == (B, V)
    # tight check against a reference that uses the same bf16 MXU operands
    assert jnp.allclose(out, ref_bf16, atol=1e-3, rtol=1e-3), \
        "mismatch vs bf16-matched reference"
    # loose check against the full-f32 reference (bf16 rounding of the operands)
    assert jnp.allclose(out, ref_f32, atol=1e-1, rtol=1e-1), \
        "mismatch vs f32 reference"

    print("KERNEL_OK")
</pallas_src>

<mosaic_0001>
module attributes {stable_mosaic.version = 11 : i64} {
  func.func @_cbow_logsoftmax_kernel(%arg0: i32, %arg1: i32, %arg2: memref<16x32xbf16, #tpu.memory_space<vmem>>, %arg3: memref<32x128xbf16, #tpu.memory_space<vmem>>, %arg4: memref<1x128xf32, #tpu.memory_space<vmem>>, %arg5: memref<16x128xf32, #tpu.memory_space<vmem>>, %arg6: memref<16x1xf32, #tpu.memory_space<vmem>>, %arg7: memref<16x1xf32, #tpu.memory_space<vmem>>) attributes {dimension_semantics = [#tpu.dimension_semantics<parallel>, #tpu.dimension_semantics<arbitrary>], iteration_bounds = array<i64: 1, 1>, scalar_prefetch = 0 : i64, scratch_operands = 2 : i64, tpu.core_type = #tpu.core_type<tc>, window_params = [{transform_indices = @transform_0, window_bounds = array<i64: 16, 32>}, {transform_indices = @transform_1, window_bounds = array<i64: 32, 128>}, {pipeline_mode = #tpu.pipeline_mode<synchronous>, transform_indices = @transform_2, window_bounds = array<i64: 1, 128>}, {transform_indices = @transform_3, window_bounds = array<i64: 16, 128>}]} {
    %c0_i32 = arith.constant 0 : i32
    %0 = arith.cmpi eq, %arg1, %c0_i32 : i32
    %1 = arith.extui %0 : i1 to i32
    %c0_i32_0 = arith.constant 0 : i32
    %2 = arith.cmpi ne, %1, %c0_i32_0 : i32
    scf.if %2 {
      %cst_20 = arith.constant 0xFF800000 : f32
      %34 = vector.broadcast %cst_20 : f32 to vector<16x1xf32>
      %c0_21 = arith.constant 0 : index
      %c0_22 = arith.constant 0 : index
      %35 = vector.load %arg6[%c0_21, %c0_22] : memref<16x1xf32, #tpu.memory_space<vmem>>, vector<16x1xf32>
      tpu.vector_store %arg6[%c0_21, %c0_22], %34 {strides = array<i32>} : memref<16x1xf32, #tpu.memory_space<vmem>>, vector<16x1xf32>,
      %cst_23 = arith.constant 0.000000e+00 : f32
      %36 = vector.broadcast %cst_23 : f32 to vector<16x1xf32>
      %c0_24 = arith.constant 0 : index
      %c0_25 = arith.constant 0 : index
      %37 = vector.load %arg7[%c0_24, %c0_25] : memref<16x1xf32, #tpu.memory_space<vmem>>, vector<16x1xf32>
      tpu.vector_store %arg7[%c0_24, %c0_25], %36 {strides = array<i32>} : memref<16x1xf32, #tpu.memory_space<vmem>>, vector<16x1xf32>,
    } else {
    }
    %c128_i32 = arith.constant 128 : i32
    %3 = arith.muli %arg1, %c128_i32 : i32
    %4 = tpu.assume_multiple %3, 128 : i32
    %c0 = arith.constant 0 : index
    %c0_1 = arith.constant 0 : index
    %5 = vector.load %arg2[%c0, %c0_1] : memref<16x32xbf16, #tpu.memory_space<vmem>>, vector<16x32xbf16>
    %c0_2 = arith.constant 0 : index
    %c0_3 = arith.constant 0 : index
    %6 = vector.load %arg3[%c0_2, %c0_3] : memref<32x128xbf16, #tpu.memory_space<vmem>>, vector<32x128xbf16>
    %cst = arith.constant dense<0.000000e+00> : vector<16x128xf32>
    %7 = tpu.matmul %5, %6, %cst {dimension_numbers = #tpu.dot_dimension_numbers<[1], [0], [0], [1], [0, 0, 1, 1], [], []>} : vector<16x32xbf16>, vector<32x128xbf16>, vector<16x128xf32> -> vector<16x128xf32>
    %c0_4 = arith.constant 0 : index
    %8 = arith.index_cast %4 : i32 to index
    %9 = vector.load %arg4[%c0_4, %8] : memref<1x128xf32, #tpu.memory_space<vmem>>, vector<1x128xf32>
    %10 = vector.broadcast %9 : vector<1x128xf32> to vector<16x128xf32>
    %11 = arith.addf %7, %10 : vector<16x128xf32>
    %c0_5 = arith.constant 0 : index
    %12 = arith.index_cast %4 : i32 to index
    %13 = vector.load %arg5[%c0_5, %12] : memref<16x128xf32, #tpu.memory_space<vmem>>, vector<16x128xf32>
    tpu.vector_store %arg5[%c0_5, %12], %11 {strides = array<i32>} : memref<16x128xf32, #tpu.memory_space<vmem>>, vector<16x128xf32>,
    %cst_6 = arith.constant dense<0xFF800000> : vector<16xf32>
    %14 = vector.multi_reduction <maximumf>, %11, %cst_6 [1] : vector<16x128xf32> to vector<16xf32>
    %15 = vector.shape_cast %14 : vector<16xf32> to vector<16x1xf32>
    %c0_7 = arith.constant 0 : index
    %c0_8 = arith.constant 0 : index
    %16 = vector.load %arg6[%c0_7, %c0_8] : memref<16x1xf32, #tpu.memory_space<vmem>>, vector<16x1xf32>
    %17 = arith.maximumf %16, %15 : vector<16x1xf32>
    %c0_9 = arith.constant 0 : index
    %c0_10 = arith.constant 0 : index
    %18 = vector.load %arg7[%c0_9, %c0_10] : memref<16x1xf32, #tpu.memory_space<vmem>>, vector<16x1xf32>
    %c0_11 = arith.constant 0 : index
    %c0_12 = arith.constant 0 : index
    %19 = vector.load %arg6[%c0_11, %c0_12] : memref<16x1xf32, #tpu.memory_space<vmem>>, vector<16x1xf32>
    %20 = arith.subf %19, %17 : vector<16x1xf32>
    %21 = math.exp %20 : vector<16x1xf32>
    %22 = arith.mulf %18, %21 : vector<16x1xf32>
    %23 = vector.broadcast %17 : vector<16x1xf32> to vector<16x128xf32>
    %24 = arith.subf %11, %23 : vector<16x128xf32>
    %25 = math.exp %24 : vector<16x128xf32>
    %cst_13 = arith.constant dense<0.000000e+00> : vector<16xf32>
    %26 = vector.multi_reduction <add>, %25, %cst_13 [1] : vector<16x128xf32> to vector<16xf32>
    %27 = vector.shape_cast %26 : vector<16xf32> to vector<16x1xf32>
    %28 = arith.addf %22, %27 : vector<16x1xf32>
    %c0_14 = arith.constant 0 : index
    %c0_15 = arith.constant 0 : index
    %29 = vector.load %arg7[%c0_14, %c0_15] : memref<16x1xf32, #tpu.memory_space<vmem>>, vector<16x1xf32>
    tpu.vector_store %arg7[%c0_14, %c0_15], %28 {strides = array<i32>} : memref<16x1xf32, #tpu.memory_space<vmem>>, vector<16x1xf32>,
    %c0_16 = arith.constant 0 : index
    %c0_17 = arith.constant 0 : index
    %30 = vector.load %arg6[%c0_16, %c0_17] : memref<16x1xf32, #tpu.memory_space<vmem>>, vector<16x1xf32>
    tpu.vector_store %arg6[%c0_16, %c0_17], %17 {strides = array<i32>} : memref<16x1xf32, #tpu.memory_space<vmem>>, vector<16x1xf32>,
    %c0_i32_18 = arith.constant 0 : i32
    %31 = arith.cmpi eq, %arg1, %c0_i32_18 : i32
    %32 = arith.extui %31 : i1 to i32
    %c0_i32_19 = arith.constant 0 : i32
    %33 = arith.cmpi ne, %32, %c0_i32_19 : i32
    scf.if %33 {
      %c0_20 = arith.constant 0 : index
      %c0_21 = arith.constant 0 : index
      %34 = vector.load %arg5[%c0_20, %c0_21] : memref<16x128xf32, #tpu.memory_space<vmem>>, vector<16x128xf32>
      %c0_22 = arith.constant 0 : index
      %c0_23 = arith.constant 0 : index
      %35 = vector.load %arg6[%c0_22, %c0_23] : memref<16x1xf32, #tpu.memory_space<vmem>>, vector<16x1xf32>
      %c0_24 = arith.constant 0 : index
      %c0_25 = arith.constant 0 : index
      %36 = vector.load %arg7[%c0_24, %c0_25] : memref<16x1xf32, #tpu.memory_space<vmem>>, vector<16x1xf32>
      %37 = math.log %36 : vector<16x1xf32>
      %38 = arith.addf %35, %37 : vector<16x1xf32>
      %39 = vector.broadcast %38 : vector<16x1xf32> to vector<16x128xf32>
      %40 = arith.subf %34, %39 : vector<16x128xf32>
      %c0_26 = arith.constant 0 : index
      %c0_27 = arith.constant 0 : index
      %41 = vector.load %arg5[%c0_26, %c0_27] : memref<16x128xf32, #tpu.memory_space<vmem>>, vector<16x128xf32>
      tpu.vector_store %arg5[%c0_26, %c0_27], %40 {strides = array<i32>} : memref<16x128xf32, #tpu.memory_space<vmem>>, vector<16x128xf32>,
    } else {
    }
    return
  }
  func.func @transform_0(%arg0: i32, %arg1: i32) -> (i32, i32) {
    %c0_i32 = arith.constant 0 : i32
    %c0_i32_0 = arith.constant 0 : i32
    return %arg0, %c0_i32 : i32, i32
  }
  func.func @transform_1(%arg0: i32, %arg1: i32) -> (i32, i32) {
    %c0_i32 = arith.constant 0 : i32
    %c0_i32_0 = arith.constant 0 : i32
    return %c0_i32, %arg1 : i32, i32
  }
  func.func @transform_2(%arg0: i32, %arg1: i32) -> (i32, i32) {
    %c0_i32 = arith.constant 0 : i32
    %c0_i32_0 = arith.constant 0 : i32
    %c0_i32_1 = arith.constant 0 : i32
    return %c0_i32, %c0_i32_0 : i32, i32
  }
  func.func @transform_3(%arg0: i32, %arg1: i32) -> (i32, i32) {
    %c0_i32 = arith.constant 0 : i32
    %c0_i32_0 = arith.constant 0 : i32
    return %arg0, %c0_i32 : i32, i32
  }
}

</mosaic_0001>

<bundles_post_ra>
// kernel: tpu_custom_call.1
= control target key start
LH: loop header
LB: loop body
LE: loop exit
PB: predicated region body
PF: predicated region fallthrough
CT: control target
= control target key end

     0   :  { %8 = vsyncpa [#allocation5], 0  ;;  %s433_s0 = inlined_call_operand.hbm [shape: bf16[16,32], index: 0, kind: input, shape index: {}]   ;;  %s434_s1 = inlined_call_operand.hbm [shape: bf16[32,128], index: 1, kind: input, shape index: {}]   ;;  %s435_s2 = inlined_call_operand.vmem [shape: f32[1,128], index: 2, kind: input, shape index: {}]   ;;  %s436_s3 = inlined_call_operand.hbm [shape: f32[16,128], index: 3, kind: output, shape index: {}]  }
   0x1   :  { %9 = vsyncpa [#allocation8], 0 }
   0x2   :  { %10 = vsyncpa [#allocation6], 0  ;;  %s345_s12 = smov [#allocation4]   ;;  %s273_s16 = scalar_lea.hbm %s433_s0, 128 }
   0x3   :  { %s16_s13 = sshll.u32 %s345_s12, 4  ;;  %p274_p0 = scmp.ne.s32.totalorder %s433_s0, %s273_s16  ;;  %s17_s13 = int_to_ptr.vmem [resolvable:$true] %s16_s13 }
   0x4   :  { %p277_p1 = scmp.lt.u32.totalorder %s273_s16, %s433_s0 }
   0x6   :  { %p279_p2 = pnand %p277_p1, %p274_p0 }
   0x8   :  { %282 = shalt.err (!%p279_p2)
}
   0x9   :  { %s283_s21 = scalar_lea.vmem %s17_s13, 128  ;;  %p288_p4 = scmp.lt.s32.totalorder %s17_s13, %s17_s13 }
   0xa   :  { %p284_p3 = scmp.ne.s32.totalorder %s17_s13, %s283_s21  ;;  %p289_p5 = scmp.lt.s32.totalorder %s283_s21, %s283_s21 }
   0xc   :  { %p290_p6 = por %p289_p5, %p288_p4 }
   0xe   :  { %p291_p7 = pnand %p290_p6, %p284_p3 }
  0x10   :  { %294 = shalt.err (!%p291_p7)
}
  0x11   :  { %s346_s22 = smov 64   ;;  %s347_s23 = smov 4  }
  0x12   :  { %22 = dma.hbm_to_vmem [thread:$0]  %s433_s0, 128, %s17_s13, [#allocation5], %s346_s22, %s346_s22, %s347_s23  }
  0x13   :  { %s348_s26 = smov [#allocation7]   ;;  %s295_s30 = scalar_lea.hbm %s434_s1, 256 }
  0x14   :  { %s28_s27 = sshll.u32 %s348_s26, 4  ;;  %p296_p8 = scmp.ne.s32.totalorder %s434_s1, %s295_s30  ;;  %s29_s27 = int_to_ptr.vmem [resolvable:$true] %s28_s27 }
  0x15   :  { %p299_p9 = scmp.lt.u32.totalorder %s295_s30, %s434_s1 }
  0x17   :  { %p301_p10 = pnand %p299_p9, %p296_p8 }
  0x19   :  { %304 = shalt.err (!%p301_p10)
}
  0x1a   :  { %s305_s8 = scalar_lea.vmem %s29_s27, 256  ;;  %p310_p12 = scmp.lt.s32.totalorder %s29_s27, %s29_s27 }
  0x1b   :  { %p306_p11 = scmp.ne.s32.totalorder %s29_s27, %s305_s8  ;;  %p311_p13 = scmp.lt.s32.totalorder %s305_s8, %s305_s8 }
  0x1d   :  { %p312_p0 = por %p311_p13, %p310_p12 }
  0x1f   :  { %p313_p1 = pnand %p312_p0, %p306_p11 }
  0x21   :  { %316 = shalt.err (!%p313_p1)
}
  0x22   :  { %34 = dma.hbm_to_vmem [thread:$0]  %s434_s1, 256, %s29_s27, [#allocation8], %s346_s22, %s346_s22, %s347_s23  }
  0x23   :  { %339 = dma.done.wait [#allocation5], 128  }
  0x24   :  { %340 = vsyncadd [#allocation5], 4294967168 }
  0x25   :  { %341 = dma.done.wait [#allocation8], 256  }
  0x26   :  { %342 = vsyncadd [#allocation8], 4294967040  ;;  %vm48_vm0 = vcmask 7168   ;;  %v349_v0 = vmov 0.0   ;;  %vm350_vm1 = vmmov 0   ;;  %v258_v1 = vld [vmem:[#allocation7] sm:$0xff]  }
  0x27   :  { %51 = vst.msk [vmem:[#allocation3] sm:$0xff] %vm48_vm0, %v349_v0  ;;  %52 = vst.msk [vmem:[#allocation3 + $0x8] sm:$0xff] %vm48_vm0, %v349_v0  ;;  %237 = vmatprep.subr.bf16.mxu0 %v349_v0  ;;  %241 = vmatprep.mubr.msk.bf16.mxu0 %vm350_vm1, %v349_v0  ;;  %v259_v2 = vld [vmem:[#allocation7 + $0x8] sm:$0xff]   ;;  %v260_v3 = vld [vmem:[#allocation4] sm:$0xff]   ;;  %vm87_vm2 = vcmask 261120   ;;  %v351_v4 = vmov -inf  }
  0x28   :  { %238 = vmatpush3.bf16.msra.mxu0 %v258_v1  ;;  %49 = vst.msk [vmem:[#allocation2] sm:$0xff] %vm48_vm0, %v351_v4  ;;  %50 = vst.msk [vmem:[#allocation2 + $0x8] sm:$0xff] %vm48_vm0, %v351_v4  ;;  %v229_v5 = vld [vmem:[%s435_s2] ss:$0 sm:$0xff]  ;;  %v352_v12 = vmov 0   ;;  %s353_s2 = smov [#allocation9]  }
  0x29   :  { %239 = vmatprep.subr.bf16.mxu0 %v349_v0  ;;  %256 = vset.pattern.permute.xlu1 %v352_v12  ;;  %s214_s11 = sshll.u32 %s353_s2, 4  ;;  %s215_s11 = int_to_ptr.vmem [resolvable:$true] %s214_s11 }
  0x2a   :  { %257 = vset.pattern.permute.xlu0 %v352_v12  ;;  %s317_s12 = scalar_lea.vmem %s215_s11, 256  ;;  %p322_p3 = scmp.lt.s32.totalorder %s215_s11, %s215_s11 }
  0x2b   :  { %p318_p2 = scmp.ne.s32.totalorder %s215_s11, %s317_s12  ;;  %p323_p4 = scmp.lt.s32.totalorder %s317_s12, %s317_s12 }
  0x2c   :  { %240 = vmatpush3.bf16.msra.mxu0 %v259_v2 }
  0x2d   :  { %p324_p5 = por %p323_p4, %p322_p3 }
  0x2e   :  { %v143_v32 = vld [vmem:[#allocation3] sm:$0xff]  ;;  %v144_v36 = vld [vmem:[#allocation3 + $0x8] sm:$0xff] }
  0x2f   :  { %242 = vmatmul.mubr.msk.bf16.vlgmr.msra.gmra.mrb[0].mxu0 %vm87_vm2, %v260_v3  ;;  %v139_v13 = vld [vmem:[#allocation2] sm:$0xff]  ;;  %v140_v16 = vld [vmem:[#allocation2 + $0x8] sm:$0xff]  ;;  %p325_p6 = pnand %p324_p5, %p318_p2 }
 0x102   :  { %v125_v6 = vpop.f32.mrb[0].mxu0 }
 0x103   :  { %v407_v7 = vadd.f32 %v229_v5, %v125_v6  ;;  %v243_v8 = vpop.f32.mrb[1].mxu0 }
 0x104   :  { %v128_v9 = vpop.f32.mrb[2].mxu0 }
 0x105   :  { %135 = vmax.xlane.f32.xlu0 %v407_v7  ;;  %v244_v10 = vpop.f32.mrb[3].mxu0  ;;  %v410_v11 = vadd.f32 %v229_v5, %v128_v9 }
 0x109   :  { %137 = vmax.xlane.f32.xlu0 %v410_v11 }
 0x192   :  { %v136_v14 = vpop.xlane.xlu0 %135 }
 0x193   :  { %v141_v15 = vmax.f32 %v139_v13, %v136_v14 }
 0x195   :  { %v145_v17 = vsub.f32 %v139_v13, %v141_v15  ;;  %178 = vst.msk [vmem:[#allocation2] sm:$0xff] %vm48_vm0, %v141_v15  ;;  %155 = vperm.xlu1 %256, %v141_v15  }
 0x196   :  { %v138_v18 = vpop.xlane.xlu0 %137 }
 0x197   :  { %v142_v19 = vmax.f32 %v140_v16, %v138_v18  ;;  %v147_v29 = vmul.f32 1.442695, %v145_v17 }
 0x199   :  { %v146_v20 = vsub.f32 %v140_v16, %v142_v19  ;;  %179 = vst.msk [vmem:[#allocation2 + $0x8] sm:$0xff] %vm48_vm0, %v142_v19  ;;  %160 = vperm.xlu1 %256, %v142_v19  }
 0x19b   :  { %v149_v30 = vmul.f32 1.442695, %v146_v20 }
 0x19c   :  { %v185_v45 = vld [vmem:[#allocation2] sm:$0xff] }
 0x1a0   :  { %v186_v49 = vld [vmem:[#allocation2 + $0x8] sm:$0xff] }
 0x214   :  { %v156_v21 = vpop.permute.xlu1 %155 }
 0x215   :  { %v163_v22 = vsub.f32 %v407_v7, %v156_v21 }
 0x217   :  { %v165_v23 = vmul.f32 1.442695, %v163_v22 }
 0x218   :  { %v161_v24 = vpop.permute.xlu1 %160 }
 0x219   :  { %261 = vpow2.f32 %v165_v23  ;;  %v164_v25 = vsub.f32 %v410_v11, %v161_v24 }
 0x21b   :  { %v167_v26 = vmul.f32 1.442695, %v164_v25 }
 0x21d   :  { %263 = vpow2.f32 %v167_v26 }
 0x21e   :  { %265 = vpow2.f32 %v147_v29 }
 0x21f   :  { %267 = vpow2.f32 %v149_v30 }
 0x223   :  { %v262_v27 = vpop.eup %261 }
 0x224   :  { %169 = vadd.xlane.f32.xlu0 %v262_v27 }
 0x227   :  { %v264_v28 = vpop.eup %263 }
 0x228   :  { %171 = vadd.xlane.f32.xlu1 %v264_v28  ;;  %v266_v31 = vpop.eup %265 }
 0x229   :  { %v151_v33 = vmul.f32 %v266_v31, %v143_v32  ;;  %v268_v34 = vpop.eup %267 }
 0x22a   :  { %v152_v38 = vmul.f32 %v268_v34, %v144_v36 }
 0x2b1   :  { %v170_v35 = vpop.xlane.xlu0 %169 }
 0x2b2   :  { %v173_v37 = vadd.f32 %v170_v35, %v151_v33 }
 0x2b4   :  { %176 = vst.msk [vmem:[#allocation3] sm:$0xff] %vm48_vm0, %v173_v37 }
 0x2b5   :  { %v172_v39 = vpop.xlane.xlu1 %171 }
 0x2b6   :  { %v174_v40 = vadd.f32 %v172_v39, %v152_v38 }
 0x2b8   :  { %177 = vst.msk [vmem:[#allocation3 + $0x8] sm:$0xff] %vm48_vm0, %v174_v40 }
 0x2bb   :  { %v187_v41 = vld [vmem:[#allocation3] sm:$0xff] }
 0x2bc   :  { %269 = vlog2.f32 %v187_v41 }
 0x2bf   :  { %v188_v42 = vld [vmem:[#allocation3 + $0x8] sm:$0xff] }
 0x2c0   :  { %271 = vlog2.f32 %v188_v42 }
 0x2c6   :  { %v270_v43 = vpop.eup %269 }
 0x2c7   :  { %v190_v44 = vmul.f32 0.6931472, %v270_v43 }
 0x2c9   :  { %v193_v46 = vadd.f32 %v190_v44, %v185_v45 }
 0x2ca   :  { %v272_v47 = vpop.eup %271 }
 0x2cb   :  { %197 = vperm.xlu0 %257, %v193_v46   ;;  %v192_v48 = vmul.f32 0.6931472, %v272_v47 }
 0x2cd   :  { %v194_v50 = vadd.f32 %v192_v48, %v186_v49 }
 0x2cf   :  { %202 = vperm.xlu1 %256, %v194_v50  }
 0x34a   :  { %v198_v51 = vpop.permute.xlu0 %197 }
 0x34b   :  { %v205_v52 = vsub.f32 %v407_v7, %v198_v51 }
 0x34d   :  { %207 = vst [vmem:[#allocation9] sm:$0xff] %v205_v52 }
 0x34e   :  { %v203_v53 = vpop.permute.xlu1 %202 }
 0x34f   :  { %v206_v54 = vsub.f32 %v410_v11, %v203_v53 }
 0x351   :  { %208 = vst [vmem:[#allocation9 + $0x8] sm:$0xff] %v206_v54 }
 0x352   :  { %328 = shalt.err (!%p325_p6)
}
 0x353   :  { %s329_s15 = scalar_lea.hbm %s436_s3, 256 }
 0x354   :  { %p330_p7 = scmp.ne.s32.totalorder %s436_s3, %s329_s15  ;;  %p333_p8 = scmp.lt.u32.totalorder %s329_s15, %s436_s3 }
 0x356   :  { %p335_p9 = pnand %p333_p8, %p330_p7 }
 0x358   :  { %338 = shalt.err (!%p335_p9)
}
 0x359   :  { %s354_s20 = smov 128   ;;  %s355_s21 = smov 8  }
 0x35a   :  { %220 = dma.vmem_to_hbm [thread:$0]  %s215_s11, 256, %s436_s3, [#allocation6], %s354_s20, %s354_s20, %s355_s21  }
 0x35b   :  { %343 = dma.done.wait [#allocation6], 256  }
 0x35c   :  { %344 = vsyncadd [#allocation6], 4294967040 }
 0x35d   :  { %224 = vsyncpa [#allocation5], 1 }
 0x35e   :  { %225 = vsyncpa [#allocation8], 1 }
 0x35f   :  { %226 = vsyncpa [#allocation6], 1 }

</bundles_post_ra>
